<compile_context>
chip_gen: v6e
topology: v6e:2x2x1
jax: 0.10.0
libtpu: 0.0.40
codegen_flags: <defaults>
</compile_context>

<pallas_src>
import math
import functools

import jax
import jax.numpy as jnp
from jax import lax
from jax.experimental import pallas as pl
from jax.experimental.pallas import tpu as pltpu

# ----------------------------- configuration -------------------------------
B = 2              # batch
S = 8              # sequence length
H = 32             # hidden_size
N_HEAD = 4         # multi_head
D = H // N_HEAD    # per-head dim
G = N_HEAD * B     # fused (head, batch) attention-batch dim, index g = h*B + b


# ------------------------------- kernel ------------------------------------
def mha_kernel(q_ref, k_ref, v_ref, mb_ref, ws_ref, bs_ref, wm_ref, bm_ref,
               o_ref, *, n_head, batch, d_head):
    # q/k/v_ref : (B, S, H)   bf16
    # mb_ref    : (G, 1, S)   f32   additive mask bias (-1e9 on masked keys)
    # ws_ref    : (3G, H, D)  bf16  stacked per-(kind, head, batch) proj weights
    # bs_ref    : (3G, 1, D)  f32   stacked proj biases
    # wm_ref    : (G, D, H)   bf16  per-(head, batch) slabs of the merge weight
    # bm_ref    : (1, 1, H)   f32   merge bias
    # o_ref     : (B, S, H)   f32
    g = n_head * batch

    q3 = q_ref[...]
    k3 = k_ref[...]
    v3 = v_ref[...]

    # Replicate inputs over heads along the leading axis so one batched
    # dot_general performs every Q/K/V projection for every head & batch.
    # Leading index = kind*G + h*B + b.
    xs = jnp.concatenate([q3] * n_head + [k3] * n_head + [v3] * n_head, axis=0)

    proj = lax.dot_general(xs, ws_ref[...],
                           (((2,), (1,)), ((0,), (0,))),
                           preferred_element_type=jnp.float32)       # (3G, S, D)
    proj = proj + bs_ref[...]                                        # bias (3G,1,D)

    q_p = proj[0:g]          # (G, S, D) f32
    k_p = proj[g:2 * g]
    v_p = proj[2 * g:3 * g]

    qb = q_p.astype(jnp.bfloat16)
    kb = k_p.astype(jnp.bfloat16)
    vb = v_p.astype(jnp.bfloat16)

    # scores[g, i, j] = <q_g[i], k_g[j]>  (contract D; no explicit transpose)
    scale = 1.0 / math.sqrt(d_head)
    scores = lax.dot_general(qb, kb, (((2,), (2,)), ((0,), (0,))),
                             preferred_element_type=jnp.float32)     # (G, S, S)
    scores = scores * scale + mb_ref[...]                            # mask bias

    # softmax over keys (f32)
    m = jnp.max(scores, axis=-1, keepdims=True)
    p = jnp.exp(scores - m)
    denom = jnp.sum(p, axis=-1, keepdims=True)
    p = p * pl.reciprocal(denom, approx=True)

    att = lax.dot_general(p.astype(jnp.bfloat16), vb,
                          (((2,), (1,)), ((0,), (0,))),
                          preferred_element_type=jnp.float32)        # (G, S, D)

    # Distribute the merge projection over heads: per-(head,batch) partial
    # outputs, then sum over heads (leading-axis adds; no lane concat).
    mo = lax.dot_general(att.astype(jnp.bfloat16), wm_ref[...],
                         (((2,), (1,)), ((0,), (0,))),
                         preferred_element_type=jnp.float32)         # (G, S, H)

    summed = mo[0:batch]
    for h in range(1, n_head):
        summed = summed + mo[h * batch:(h + 1) * batch]              # (B, S, H)

    o_ref[...] = (summed + bm_ref[...]).astype(o_ref.dtype)


# ------------------------------- wrapper ------------------------------------
def _replicate_over_batch(x, batch):
    # (n_head, ...) -> (n_head * batch, ...), leading index = h*batch + b
    return jnp.broadcast_to(x[:, None], (x.shape[0], batch) + x.shape[1:]) \
              .reshape((x.shape[0] * batch,) + x.shape[1:])


def multi_head_attention(v, k, q, mask, params):
    """params: PyTorch nn.Linear layout (w is (out, in), y = x @ w.T + b)."""
    bsz, seq, hid = q.shape
    assert (bsz, seq, hid) == (B, S, H)

    f32, bf16 = jnp.float32, jnp.bfloat16

    def per_head_w(w):           # (H_out, H_in) -> (n_head, H_in, D)
        return w.T.reshape(H, N_HEAD, D).transpose(1, 0, 2)

    wq_g = _replicate_over_batch(per_head_w(params["wq"]), B)
    wk_g = _replicate_over_batch(per_head_w(params["wk"]), B)
    wv_g = _replicate_over_batch(per_head_w(params["wv"]), B)
    ws = jnp.concatenate([wq_g, wk_g, wv_g], axis=0).astype(bf16)     # (3G, H, D)

    def per_head_b(b):           # (H,) -> (G, 1, D)
        return _replicate_over_batch(b.reshape(N_HEAD, D), B)[:, None, :]

    bs = jnp.concatenate([per_head_b(params["bq"]),
                          per_head_b(params["bk"]),
                          per_head_b(params["bv"])], axis=0).astype(f32)  # (3G,1,D)

    # merge weight, split by head: wm_g[h*B+b, d, :] = wm[:, h*D+d]
    wm_g = _replicate_over_batch(params["wm"].T.reshape(N_HEAD, D, H), B).astype(bf16)
    bm = params["bm"].reshape(1, 1, H).astype(f32)

    # additive mask bias, hoisted & expanded once: (B,1,S) -> (G,1,S)
    neg = jnp.where(mask, -1e9, 0.0).astype(f32)                      # (B, 1, S)
    mb = jnp.broadcast_to(neg[None], (N_HEAD, B, 1, S)).reshape(G, 1, S)

    kernel = functools.partial(mha_kernel, n_head=N_HEAD, batch=B, d_head=D)
    vmem = pl.BlockSpec(memory_space=pltpu.MemorySpace.VMEM)

    return pl.pallas_call(
        kernel,
        out_shape=jax.ShapeDtypeStruct((B, S, H), jnp.float32),
        in_specs=[vmem] * 8,
        out_specs=vmem,
    )(q.astype(bf16), k.astype(bf16), v.astype(bf16), mb, ws, bs, wm_g, bm)


# ----------------------------- pure-JAX reference ---------------------------
def reference(v, k, q, mask, params):
    def lin(x, w, b):
        return x @ w.T + b

    def split_heads(x):
        return x.reshape(B, S, N_HEAD, D).transpose(0, 2, 1, 3)      # (B, nH, S, D)

    qp = split_heads(lin(q, params["wq"], params["bq"]))
    kp = split_heads(lin(k, params["wk"], params["bk"]))
    vp = split_heads(lin(v, params["wv"], params["bv"]))

    scores = jnp.einsum("bhqd,bhkd->bhqk", qp, kp) / math.sqrt(D)
    m = mask[:, None, :, :]                                          # (B,1,1,S)
    scores = jnp.where(m, -1e9, scores)
    att = jax.nn.softmax(scores, axis=-1)
    out = jnp.einsum("bhqk,bhkd->bhqd", att, vp)
    out = out.transpose(0, 2, 1, 3).reshape(B, S, H)
    return lin(out, params["wm"], params["bm"])


# --------------------------------- main --------------------------------------
if __name__ == "__main__":
    key = jax.random.PRNGKey(0)
    ks = jax.random.split(key, 12)

    # Deterministic synthetic parameters (PyTorch nn.Linear shapes: (out, in)).
    params = {
        "wq": jax.random.normal(ks[0], (H, H), jnp.float32) * 0.1,
        "bq": jax.random.normal(ks[1], (H,), jnp.float32) * 0.1,
        "wk": jax.random.normal(ks[2], (H, H), jnp.float32) * 0.1,
        "bk": jax.random.normal(ks[3], (H,), jnp.float32) * 0.1,
        "wv": jax.random.normal(ks[4], (H, H), jnp.float32) * 0.1,
        "bv": jax.random.normal(ks[5], (H,), jnp.float32) * 0.1,
        "wm": jax.random.normal(ks[6], (H, H), jnp.float32) * 0.1,
        "bm": jax.random.normal(ks[7], (H,), jnp.float32) * 0.1,
    }

    q = jax.random.normal(ks[8], (B, S, H), jnp.float32)
    k = jax.random.normal(ks[9], (B, S, H), jnp.float32)
    v = jax.random.normal(ks[10], (B, S, H), jnp.float32)

    # mask: True (1) => masked-out key position; per-batch valid lengths 5 and 7.
    lengths = jnp.array([5, 7], dtype=jnp.int32)
    pos = jnp.arange(S, dtype=jnp.int32)
    mask = (pos[None, None, :] >= lengths[:, None, None])            # (B, 1, S)

    out = multi_head_attention(v, k, q, mask, params)
    out = jax.block_until_ready(out)

    ref = reference(v, k, q, mask, params)
    # bf16 MXU operands + approx reciprocal -> looser tolerance than pure f32.
    assert jnp.allclose(out, ref, atol=5e-2, rtol=5e-2), (
        f"max err {jnp.max(jnp.abs(out - ref))}")

    print("KERNEL_OK")
</pallas_src>

<mosaic_0001>
module attributes {stable_mosaic.version = 11 : i64} {
  func.func @mha_kernel(%arg0: memref<2x8x32xbf16, #tpu.memory_space<vmem>>, %arg1: memref<2x8x32xbf16, #tpu.memory_space<vmem>>, %arg2: memref<2x8x32xbf16, #tpu.memory_space<vmem>>, %arg3: memref<8x1x8xf32, #tpu.memory_space<vmem>>, %arg4: memref<24x32x8xbf16, #tpu.memory_space<vmem>>, %arg5: memref<24x1x8xf32, #tpu.memory_space<vmem>>, %arg6: memref<8x8x32xbf16, #tpu.memory_space<vmem>>, %arg7: memref<1x1x32xf32, #tpu.memory_space<vmem>>, %arg8: memref<2x8x32xf32, #tpu.memory_space<vmem>>) attributes {dimension_semantics = [], scalar_prefetch = 0 : i64, scratch_operands = 0 : i64, tpu.core_type = #tpu.core_type<tc>} {
    %c0 = arith.constant 0 : index
    %c0_0 = arith.constant 0 : index
    %c0_1 = arith.constant 0 : index
    %0 = vector.load %arg0[%c0, %c0_0, %c0_1] : memref<2x8x32xbf16, #tpu.memory_space<vmem>>, vector<2x8x32xbf16>
    %c0_2 = arith.constant 0 : index
    %c0_3 = arith.constant 0 : index
    %c0_4 = arith.constant 0 : index
    %1 = vector.load %arg1[%c0_2, %c0_3, %c0_4] : memref<2x8x32xbf16, #tpu.memory_space<vmem>>, vector<2x8x32xbf16>
    %c0_5 = arith.constant 0 : index
    %c0_6 = arith.constant 0 : index
    %c0_7 = arith.constant 0 : index
    %2 = vector.load %arg2[%c0_5, %c0_6, %c0_7] : memref<2x8x32xbf16, #tpu.memory_space<vmem>>, vector<2x8x32xbf16>
    %3 = tpu.concatenate %0, %0, %0, %0, %1, %1, %1, %1, %2, %2, %2, %2 in 0 : vector<2x8x32xbf16>, vector<2x8x32xbf16>, vector<2x8x32xbf16>, vector<2x8x32xbf16>, vector<2x8x32xbf16>, vector<2x8x32xbf16>, vector<2x8x32xbf16>, vector<2x8x32xbf16>, vector<2x8x32xbf16>, vector<2x8x32xbf16>, vector<2x8x32xbf16>, vector<2x8x32xbf16> -> vector<24x8x32xbf16>
    %c0_8 = arith.constant 0 : index
    %c0_9 = arith.constant 0 : index
    %c0_10 = arith.constant 0 : index
    %4 = vector.load %arg4[%c0_8, %c0_9, %c0_10] : memref<24x32x8xbf16, #tpu.memory_space<vmem>>, vector<24x32x8xbf16>
    %cst = arith.constant dense<0.000000e+00> : vector<24x8x8xf32>
    %5 = tpu.matmul %3, %4, %cst {dimension_numbers = #tpu.dot_dimension_numbers<[2], [1], [1], [2], [0, 0, 0, 1, 1, 2], [0], [0]>} : vector<24x8x32xbf16>, vector<24x32x8xbf16>, vector<24x8x8xf32> -> vector<24x8x8xf32>
    %c0_11 = arith.constant 0 : index
    %c0_12 = arith.constant 0 : index
    %c0_13 = arith.constant 0 : index
    %6 = vector.load %arg5[%c0_11, %c0_12, %c0_13] : memref<24x1x8xf32, #tpu.memory_space<vmem>>, vector<24x1x8xf32>
    %7 = vector.broadcast %6 : vector<24x1x8xf32> to vector<24x8x8xf32>
    %8 = arith.addf %5, %7 : vector<24x8x8xf32>
    %9 = vector.extract_strided_slice %8 {offsets = [0, 0, 0], sizes = [8, 8, 8], strides = [1, 1, 1]} : vector<24x8x8xf32> to vector<8x8x8xf32>
    %10 = vector.extract_strided_slice %8 {offsets = [8, 0, 0], sizes = [8, 8, 8], strides = [1, 1, 1]} : vector<24x8x8xf32> to vector<8x8x8xf32>
    %11 = vector.extract_strided_slice %8 {offsets = [16, 0, 0], sizes = [8, 8, 8], strides = [1, 1, 1]} : vector<24x8x8xf32> to vector<8x8x8xf32>
    %12 = arith.truncf %9 : vector<8x8x8xf32> to vector<8x8x8xbf16>
    %13 = arith.truncf %10 : vector<8x8x8xf32> to vector<8x8x8xbf16>
    %14 = arith.truncf %11 : vector<8x8x8xf32> to vector<8x8x8xbf16>
    %cst_14 = arith.constant dense<0.000000e+00> : vector<8x8x8xf32>
    %15 = tpu.matmul %12, %13, %cst_14 {dimension_numbers = #tpu.dot_dimension_numbers<[2], [2], [1], [1], [0, 0, 0, 1, 1, 1], [0], [0]>} : vector<8x8x8xbf16>, vector<8x8x8xbf16>, vector<8x8x8xf32> -> vector<8x8x8xf32>
    %cst_15 = arith.constant 0.353553385 : f32
    %16 = vector.broadcast %cst_15 : f32 to vector<8x8x8xf32>
    %17 = arith.mulf %15, %16 : vector<8x8x8xf32>
    %c0_16 = arith.constant 0 : index
    %c0_17 = arith.constant 0 : index
    %c0_18 = arith.constant 0 : index
    %18 = vector.load %arg3[%c0_16, %c0_17, %c0_18] : memref<8x1x8xf32, #tpu.memory_space<vmem>>, vector<8x1x8xf32>
    %19 = vector.broadcast %18 : vector<8x1x8xf32> to vector<8x8x8xf32>
    %20 = arith.addf %17, %19 : vector<8x8x8xf32>
    %cst_19 = arith.constant dense<0xFF800000> : vector<8x8xf32>
    %21 = vector.multi_reduction <maximumf>, %20, %cst_19 [2] : vector<8x8x8xf32> to vector<8x8xf32>
    %22 = vector.shape_cast %21 : vector<8x8xf32> to vector<8x8x1xf32>
    %23 = vector.broadcast %22 : vector<8x8x1xf32> to vector<8x8x8xf32>
    %24 = arith.subf %20, %23 : vector<8x8x8xf32>
    %25 = math.exp %24 : vector<8x8x8xf32>
    %cst_20 = arith.constant dense<0.000000e+00> : vector<8x8xf32>
    %26 = vector.multi_reduction <add>, %25, %cst_20 [2] : vector<8x8x8xf32> to vector<8x8xf32>
    %27 = vector.shape_cast %26 : vector<8x8xf32> to vector<8x8x1xf32>
    %28 = tpu.reciprocal %27 {approx = true} : vector<8x8x1xf32> -> vector<8x8x1xf32>
    %29 = vector.broadcast %28 : vector<8x8x1xf32> to vector<8x8x8xf32>
    %30 = arith.mulf %25, %29 : vector<8x8x8xf32>
    %31 = arith.truncf %30 : vector<8x8x8xf32> to vector<8x8x8xbf16>
    %cst_21 = arith.constant dense<0.000000e+00> : vector<8x8x8xf32>
    %32 = tpu.matmul %31, %14, %cst_21 {dimension_numbers = #tpu.dot_dimension_numbers<[2], [1], [1], [2], [0, 0, 0, 1, 1, 2], [0], [0]>} : vector<8x8x8xbf16>, vector<8x8x8xbf16>, vector<8x8x8xf32> -> vector<8x8x8xf32>
    %33 = arith.truncf %32 : vector<8x8x8xf32> to vector<8x8x8xbf16>
    %c0_22 = arith.constant 0 : index
    %c0_23 = arith.constant 0 : index
    %c0_24 = arith.constant 0 : index
    %34 = vector.load %arg6[%c0_22, %c0_23, %c0_24] : memref<8x8x32xbf16, #tpu.memory_space<vmem>>, vector<8x8x32xbf16>
    %cst_25 = arith.constant dense<0.000000e+00> : vector<8x8x32xf32>
    %35 = tpu.matmul %33, %34, %cst_25 {dimension_numbers = #tpu.dot_dimension_numbers<[2], [1], [1], [2], [0, 0, 0, 1, 1, 2], [0], [0]>} : vector<8x8x8xbf16>, vector<8x8x32xbf16>, vector<8x8x32xf32> -> vector<8x8x32xf32>
    %36 = vector.extract_strided_slice %35 {offsets = [0, 0, 0], sizes = [2, 8, 32], strides = [1, 1, 1]} : vector<8x8x32xf32> to vector<2x8x32xf32>
    %37 = vector.extract_strided_slice %35 {offsets = [2, 0, 0], sizes = [2, 8, 32], strides = [1, 1, 1]} : vector<8x8x32xf32> to vector<2x8x32xf32>
    %38 = arith.addf %36, %37 : vector<2x8x32xf32>
    %39 = vector.extract_strided_slice %35 {offsets = [4, 0, 0], sizes = [2, 8, 32], strides = [1, 1, 1]} : vector<8x8x32xf32> to vector<2x8x32xf32>
    %40 = arith.addf %38, %39 : vector<2x8x32xf32>
    %41 = vector.extract_strided_slice %35 {offsets = [6, 0, 0], sizes = [2, 8, 32], strides = [1, 1, 1]} : vector<8x8x32xf32> to vector<2x8x32xf32>
    %42 = arith.addf %40, %41 : vector<2x8x32xf32>
    %c0_26 = arith.constant 0 : index
    %c0_27 = arith.constant 0 : index
    %c0_28 = arith.constant 0 : index
    %43 = vector.load %arg7[%c0_26, %c0_27, %c0_28] : memref<1x1x32xf32, #tpu.memory_space<vmem>>, vector<1x1x32xf32>
    %44 = vector.broadcast %43 : vector<1x1x32xf32> to vector<2x8x32xf32>
    %45 = arith.addf %42, %44 : vector<2x8x32xf32>
    %c0_29 = arith.constant 0 : index
    %c0_30 = arith.constant 0 : index
    %c0_31 = arith.constant 0 : index
    %46 = vector.load %arg8[%c0_29, %c0_30, %c0_31] : memref<2x8x32xf32, #tpu.memory_space<vmem>>, vector<2x8x32xf32>
    tpu.vector_store %arg8[%c0_29, %c0_30, %c0_31], %45 {strides = array<i32>} : memref<2x8x32xf32, #tpu.memory_space<vmem>>, vector<2x8x32xf32>,
    return
  }
}

</mosaic_0001>

<bundles_post_ra>
// kernel: tpu_custom_call.1
= control target key start
LH: loop header
LB: loop body
LE: loop exit
PB: predicated region body
PF: predicated region fallthrough
CT: control target
= control target key end

     0   :  { %v3607_v1 = vmov 0.0   ;;  %vm3608_vm0 = vmmov 0   ;;  %vm313_vm1 = vcmask 261120   ;;  %s4267_s0 = inlined_call_operand.vmem [shape: bf16[2,8,32], index: 0, kind: input, shape index: {}]   ;;  %s4268_s1 = inlined_call_operand.vmem [shape: bf16[2,8,32], index: 1, kind: input, shape index: {}]   ;;  %s4269_s2 = inlined_call_operand.vmem [shape: bf16[2,8,32], index: 2, kind: input, shape index: {}]   ;;  %s4270_s3 = inlined_call_operand.vmem [shape: f32[8,1,8], index: 3, kind: input, shape index: {}]   ;;  %s4271_s4 = inlined_call_operand.vmem [shape: bf16[24,32,8], index: 4, kind: input, shape index: {}]   ;;  %s4272_s5 = inlined_call_operand.vmem [shape: f32[24,1,8], index: 5, kind: input, shape index: {}]   ;;  %s4273_s6 = inlined_call_operand.vmem [shape: bf16[8,8,32], index: 6, kind: input, shape index: {}]   ;;  %s4274_s7 = inlined_call_operand.vmem [shape: f32[1,1,32], index: 7, kind: input, shape index: {}]   ;;  %s4275_s8 = inlined_call_operand.hbm [shape: f32[2,8,32], index: 8, kind: output, shape index: {}]  }
   0x1   :  { %v3505_v0 = vld [vmem:[%s4271_s4 + $0x8] sm:$0xff]   ;;  %3164 = vmatprep.subr.bf16.mxu0 %v3607_v1  ;;  %3172 = vmatprep.subr.bf16.mxu1 %v3607_v1  ;;  %v3506_v2 = vld [vmem:[%s4271_s4 + $0x18] sm:$0xff]   ;;  %v3507_v3 = vld [vmem:[%s4271_s4] sm:$0xff]  }
   0x2   :  { %3165 = vmatpush3.bf16.msra.mxu0 %v3505_v0  ;;  %3168 = vmatprep.mubr.msk.bf16.mxu0 %vm3608_vm0, %v3607_v1  ;;  %v3508_v4 = vld [vmem:[%s4271_s4 + $0x10] sm:$0xff]   ;;  %v31_v5 = vld [vmem:[%s4267_s0] sm:$0xf]  ;;  %v32_v6 = vld [vmem:[%s4267_s0 + $0x4] sm:$0xf] }
   0x3   :  { %3173 = vmatpush3.bf16.msra.mxu1 %v3506_v2  ;;  %3166 = vmatprep.subr.bf16.mxu0 %v3607_v1  ;;  %v3509_v7 = vld [vmem:[%s4271_s4 + $0x28] sm:$0xff]   ;;  %v3510_v8 = vld [vmem:[%s4271_s4 + $0x38] sm:$0xff]   ;;  %v3511_v9 = vld [vmem:[%s4271_s4 + $0x20] sm:$0xff]  }
   0x4   :  { %3174 = vmatprep.subr.bf16.mxu1 %v3607_v1  ;;  %3176 = vmatprep.mubr.msk.bf16.mxu1 %vm3608_vm0, %v3607_v1  ;;  %v3512_v10 = vld [vmem:[%s4271_s4 + $0x30] sm:$0xff]   ;;  %v3513_v11 = vld [vmem:[%s4271_s4 + $0x48] sm:$0xff]   ;;  %v3514_v12 = vld [vmem:[%s4271_s4 + $0x58] sm:$0xff]  }
   0x5   :  { %v3515_v13 = vld [vmem:[%s4271_s4 + $0x40] sm:$0xff]   ;;  %v3516_v14 = vld [vmem:[%s4271_s4 + $0x50] sm:$0xff]   ;;  %v3517_v15 = vld [vmem:[%s4271_s4 + $0x68] sm:$0xff]  }
   0x6   :  { %3167 = vmatpush3.bf16.msra.mxu0 %v3507_v3  ;;  %v3518_v16 = vld [vmem:[%s4271_s4 + $0x78] sm:$0xff]   ;;  %v3519_v17 = vld [vmem:[%s4271_s4 + $0x60] sm:$0xff]   ;;  %v3520_v18 = vld [vmem:[%s4271_s4 + $0x70] sm:$0xff]  }
   0x7   :  { %3175 = vmatpush3.bf16.msra.mxu1 %v3508_v4  ;;  %3180 = vmatprep.subr.bf16.mxu0 %v3607_v1  ;;  %v3521_v19 = vld [vmem:[%s4271_s4 + $0x88] sm:$0xff]   ;;  %v3522_v20 = vld [vmem:[%s4271_s4 + $0x98] sm:$0xff]   ;;  %v3523_v21 = vld [vmem:[%s4271_s4 + $0x80] sm:$0xff]  }
   0x8   :  { %3188 = vmatprep.subr.bf16.mxu1 %v3607_v1  ;;  %v3524_v22 = vld [vmem:[%s4271_s4 + $0x90] sm:$0xff]   ;;  %v33_v23 = vld [vmem:[%s4268_s1] sm:$0xf]  ;;  %v3525_v24 = vld [vmem:[%s4271_s4 + $0xa8] sm:$0xff]  }
   0x9   :  { %3169 = vmatmul.mubr.msk.bf16.vlgmr.msra.gmra.mxu0 %vm313_vm1, %v31_v5  ;;  %v34_v25 = vld [vmem:[%s4268_s1 + $0x4] sm:$0xf]  ;;  %v3526_v26 = vld [vmem:[%s4271_s4 + $0xb8] sm:$0xff]   ;;  %v3528_v28 = vld [vmem:[%s4271_s4 + $0xb0] sm:$0xff]  }
   0xa   :  { %3177 = vmatmul.mubr.msk.bf16.vlgmr.msra.gmra.mxu1 %vm313_vm1, %v32_v6  ;;  %3181 = vmatpush3.bf16.msra.mxu0 %v3509_v7  ;;  %v3527_v27 = vld [vmem:[%s4271_s4 + $0xa0] sm:$0xff]  }
   0xb   :  { %3189 = vmatpush3.bf16.msra.mxu1 %v3510_v8  ;;  %3182 = vmatprep.subr.bf16.mxu0 %v3607_v1 }
   0xc   :  { %3190 = vmatprep.subr.bf16.mxu1 %v3607_v1  ;;  %3184 = vmatprep.mubr.msk.bf16.mxu0 %vm3608_vm0, %v3607_v1 }
   0xd   :  { %3192 = vmatprep.mubr.msk.bf16.mxu1 %vm3608_vm0, %v3607_v1 }
   0xe   :  { %3183 = vmatpush3.bf16.msra.mxu0 %v3511_v9 }
   0xf   :  { %3191 = vmatpush3.bf16.msra.mxu1 %v3512_v10  ;;  %3196 = vmatprep.subr.bf16.mxu0 %v3607_v1 }
  0x10   :  { %3204 = vmatprep.subr.bf16.mxu1 %v3607_v1 }
  0x11   :  { %3185 = vmatmul.mubr.msk.bf16.vlgmr.msra.gmra.mxu0 %vm313_vm1, %v31_v5 }
  0x12   :  { %3193 = vmatmul.mubr.msk.bf16.vlgmr.msra.gmra.mxu1 %vm313_vm1, %v32_v6  ;;  %3197 = vmatpush3.bf16.msra.mxu0 %v3513_v11 }
  0x13   :  { %3205 = vmatpush3.bf16.msra.mxu1 %v3514_v12  ;;  %3198 = vmatprep.subr.bf16.mxu0 %v3607_v1 }
  0x14   :  { %3206 = vmatprep.subr.bf16.mxu1 %v3607_v1  ;;  %3200 = vmatprep.mubr.msk.bf16.mxu0 %vm3608_vm0, %v3607_v1 }
  0x15   :  { %3208 = vmatprep.mubr.msk.bf16.mxu1 %vm3608_vm0, %v3607_v1 }
  0x16   :  { %3199 = vmatpush3.bf16.msra.mxu0 %v3515_v13 }
  0x17   :  { %3207 = vmatpush3.bf16.msra.mxu1 %v3516_v14  ;;  %3212 = vmatprep.subr.bf16.mxu0 %v3607_v1 }
  0x18   :  { %3220 = vmatprep.subr.bf16.mxu1 %v3607_v1 }
  0x19   :  { %3201 = vmatmul.mubr.msk.bf16.vlgmr.msra.gmra.mxu0 %vm313_vm1, %v31_v5 }
  0x1a   :  { %3209 = vmatmul.mubr.msk.bf16.vlgmr.msra.gmra.mxu1 %vm313_vm1, %v32_v6  ;;  %3213 = vmatpush3.bf16.msra.mxu0 %v3517_v15 }
  0x1b   :  { %3221 = vmatpush3.bf16.msra.mxu1 %v3518_v16  ;;  %3214 = vmatprep.subr.bf16.mxu0 %v3607_v1 }
  0x1c   :  { %3222 = vmatprep.subr.bf16.mxu1 %v3607_v1  ;;  %3216 = vmatprep.mubr.msk.bf16.mxu0 %vm3608_vm0, %v3607_v1 }
  0x1d   :  { %3224 = vmatprep.mubr.msk.bf16.mxu1 %vm3608_vm0, %v3607_v1 }
  0x1e   :  { %3215 = vmatpush3.bf16.msra.mxu0 %v3519_v17 }
  0x1f   :  { %3223 = vmatpush3.bf16.msra.mxu1 %v3520_v18  ;;  %3228 = vmatprep.subr.bf16.mxu0 %v3607_v1 }
  0x20   :  { %3236 = vmatprep.subr.bf16.mxu1 %v3607_v1 }
  0x21   :  { %3217 = vmatmul.mubr.msk.bf16.vlgmr.msra.gmra.mxu0 %vm313_vm1, %v31_v5 }
  0x22   :  { %3225 = vmatmul.mubr.msk.bf16.vlgmr.msra.gmra.mxu1 %vm313_vm1, %v32_v6  ;;  %3229 = vmatpush3.bf16.msra.mxu0 %v3521_v19 }
  0x23   :  { %3237 = vmatpush3.bf16.msra.mxu1 %v3522_v20  ;;  %3230 = vmatprep.subr.bf16.mxu0 %v3607_v1 }
  0x24   :  { %3238 = vmatprep.subr.bf16.mxu1 %v3607_v1  ;;  %3232 = vmatprep.mubr.msk.bf16.mxu0 %vm3608_vm0, %v3607_v1 }
  0x25   :  { %3240 = vmatprep.mubr.msk.bf16.mxu1 %vm3608_vm0, %v3607_v1 }
  0x26   :  { %3231 = vmatpush3.bf16.msra.mxu0 %v3523_v21 }
  0x27   :  { %3239 = vmatpush3.bf16.msra.mxu1 %v3524_v22  ;;  %3244 = vmatprep.subr.bf16.mxu0 %v3607_v1 }
  0x28   :  { %3252 = vmatprep.subr.bf16.mxu1 %v3607_v1 }
  0x29   :  { %3233 = vmatmul.mubr.msk.bf16.vlgmr.msra.gmra.mxu0 %vm313_vm1, %v33_v23 }
  0x2a   :  { %3241 = vmatmul.mubr.msk.bf16.vlgmr.msra.gmra.mxu1 %vm313_vm1, %v34_v25  ;;  %3245 = vmatpush3.bf16.msra.mxu0 %v3525_v24 }
  0x2b   :  { %3253 = vmatpush3.bf16.msra.mxu1 %v3526_v26  ;;  %3246 = vmatprep.subr.bf16.mxu0 %v3607_v1 }
  0x2c   :  { %3254 = vmatprep.subr.bf16.mxu1 %v3607_v1  ;;  %3248 = vmatprep.mubr.msk.bf16.mxu0 %vm3608_vm0, %v3607_v1 }
  0x2d   :  { %13 = vsyncpa [#allocation3], 0  ;;  %3256 = vmatprep.mubr.msk.bf16.mxu1 %vm3608_vm0, %v3607_v1  ;;  %v3529_v29 = vld [vmem:[%s4271_s4 + $0xc8] sm:$0xff]   ;;  %v3530_v30 = vld [vmem:[%s4271_s4 + $0xd8] sm:$0xff]   ;;  %vm1592_vm2 = vcmask 64512   ;;  %vm2132_vm3 = vcmask 1043456  }
  0x2e   :  { %3247 = vmatpush3.bf16.msra.mxu0 %v3527_v27  ;;  %v3531_v31 = vld [vmem:[%s4271_s4 + $0xc0] sm:$0xff]   ;;  %v3532_v32 = vld [vmem:[%s4271_s4 + $0xd0] sm:$0xff]   ;;  %v3533_v33 = vld [vmem:[%s4271_s4 + $0xe8] sm:$0xff]  }
  0x2f   :  { %3255 = vmatpush3.bf16.msra.mxu1 %v3528_v28  ;;  %3260 = vmatprep.subr.bf16.mxu0 %v3607_v1  ;;  %v3534_v34 = vld [vmem:[%s4271_s4 + $0xf8] sm:$0xff]   ;;  %v3535_v35 = vld [vmem:[%s4271_s4 + $0xe0] sm:$0xff]   ;;  %v3536_v36 = vld [vmem:[%s4271_s4 + $0xf0] sm:$0xff]  }
  0x30   :  { %3268 = vmatprep.subr.bf16.mxu1 %v3607_v1  ;;  %v3537_v37 = vld [vmem:[%s4271_s4 + $0x108] sm:$0xff]   ;;  %v3538_v38 = vld [vmem:[%s4271_s4 + $0x100] sm:$0xff]   ;;  %v3539_v39 = vld [vmem:[%s4271_s4 + $0x118] sm:$0xff]  }
  0x31   :  { %3249 = vmatmul.mubr.msk.bf16.vlgmr.msra.gmra.mxu0 %vm313_vm1, %v33_v23  ;;  %v35_v40 = vld [vmem:[%s4269_s2] sm:$0xf]  ;;  %v3540_v41 = vld [vmem:[%s4271_s4 + $0x110] sm:$0xff]   ;;  %v3541_v42 = vld [vmem:[%s4271_s4 + $0x128] sm:$0xff]  }
  0x32   :  { %3257 = vmatmul.mubr.msk.bf16.vlgmr.msra.gmra.mxu1 %vm313_vm1, %v34_v25  ;;  %3261 = vmatpush3.bf16.msra.mxu0 %v3529_v29  ;;  %v36_v43 = vld [vmem:[%s4269_s2 + $0x4] sm:$0xf]  ;;  %v3543_v45 = vld [vmem:[%s4271_s4 + $0x138] sm:$0xff]   ;;  %v3544_v46 = vld [vmem:[%s4271_s4 + $0x130] sm:$0xff]  }
  0x33   :  { %3269 = vmatpush3.bf16.msra.mxu1 %v3530_v30  ;;  %3262 = vmatprep.subr.bf16.mxu0 %v3607_v1  ;;  %v3542_v44 = vld [vmem:[%s4271_s4 + $0x120] sm:$0xff]   ;;  %v3545_v47 = vld [vmem:[%s4271_s4 + $0x148] sm:$0xff]   ;;  %v3547_v49 = vld [vmem:[%s4271_s4 + $0x158] sm:$0xff]  }
  0x34   :  { %3270 = vmatprep.subr.bf16.mxu1 %v3607_v1  ;;  %3264 = vmatprep.mubr.msk.bf16.mxu0 %vm3608_vm0, %v3607_v1  ;;  %v3546_v48 = vld [vmem:[%s4271_s4 + $0x140] sm:$0xff]   ;;  %v3548_v50 = vld [vmem:[%s4271_s4 + $0x150] sm:$0xff]   ;;  %v3549_v51 = vld [vmem:[%s4271_s4 + $0x168] sm:$0xff]  }
  0x35   :  { %3272 = vmatprep.mubr.msk.bf16.mxu1 %vm3608_vm0, %v3607_v1  ;;  %v3550_v52 = vld [vmem:[%s4271_s4 + $0x160] sm:$0xff]   ;;  %v3551_v53 = vld [vmem:[%s4271_s4 + $0x178] sm:$0xff]   ;;  %v3552_v54 = vld [vmem:[%s4271_s4 + $0x170] sm:$0xff]   ;;  %s3609_s4 = smov [#allocation2]  }
  0x36   :  { %3263 = vmatpush3.bf16.msra.mxu0 %v3531_v31  ;;  %s2904_s17 = sshll.u32 %s3609_s4, 4  ;;  %s2905_s17 = int_to_ptr.vmem [resolvable:$true] %s2904_s17 }
  0x37   :  { %3271 = vmatpush3.bf16.msra.mxu1 %v3532_v32  ;;  %3276 = vmatprep.subr.bf16.mxu0 %v3607_v1  ;;  %p3590_p1 = scmp.lt.s32.totalorder %s2905_s17, %s2905_s17 }
  0x38   :  { %3284 = vmatprep.subr.bf16.mxu1 %v3607_v1 }
  0x39   :  { %3265 = vmatmul.mubr.msk.bf16.vlgmr.msra.gmra.mxu0 %vm313_vm1, %v33_v23 }
  0x3a   :  { %3273 = vmatmul.mubr.msk.bf16.vlgmr.msra.gmra.mxu1 %vm313_vm1, %v34_v25  ;;  %3277 = vmatpush3.bf16.msra.mxu0 %v3533_v33  ;;  %v2915_v33 = vld [vmem:[%s4272_s5] ss:$0 sm:$0xff] }
  0x3b   :  { %3285 = vmatpush3.bf16.msra.mxu1 %v3534_v34  ;;  %3278 = vmatprep.subr.bf16.mxu0 %v3607_v1 }
  0x3c   :  { %3286 = vmatprep.subr.bf16.mxu1 %v3607_v1  ;;  %3280 = vmatprep.mubr.msk.bf16.mxu0 %vm3608_vm0, %v3607_v1 }
  0x3d   :  { %3288 = vmatprep.mubr.msk.bf16.mxu1 %vm3608_vm0, %v3607_v1 }
  0x3e   :  { %3279 = vmatpush3.bf16.msra.mxu0 %v3535_v35 }
  0x3f   :  { %3287 = vmatpush3.bf16.msra.mxu1 %v3536_v36  ;;  %3292 = vmatprep.subr.bf16.mxu0 %v3607_v1  ;;  %v2916_v36 = vld [vmem:[%s4272_s5 + $0x1] ss:$0 sm:$0xff] }
  0x40   :  { %3300 = vmatprep.subr.bf16.mxu1 %v3607_v1 }
  0x41   :  { %3281 = vmatmul.mubr.msk.bf16.vlgmr.msra.gmra.mxu0 %vm313_vm1, %v33_v23  ;;  %v2923_v23 = vld [vmem:[%s4272_s5 + $0x8] ss:$0 sm:$0xff] }
  0x42   :  { %3289 = vmatmul.mubr.msk.bf16.vlgmr.msra.gmra.mxu1 %vm313_vm1, %v34_v25  ;;  %3296 = vmatprep.mubr.msk.bf16.mxu0 %vm3608_vm0, %v3607_v1  ;;  %v2924_v25 = vld [vmem:[%s4272_s5 + $0x9] ss:$0 sm:$0xff] }
  0x43   :  { %3304 = vmatprep.mubr.msk.bf16.mxu1 %vm3608_vm0, %v3607_v1  ;;  %3293 = vmatpush3.bf16.msra.mxu0 %v3537_v37 }
  0x44   :  { %3294 = vmatprep.subr.bf16.mxu0 %v3607_v1  ;;  %3301 = vmatpush3.bf16.msra.mxu1 %v3539_v39 }
  0x45   :  { %3302 = vmatprep.subr.bf16.mxu1 %v3607_v1 }
  0x47   :  { %3295 = vmatpush3.bf16.msra.mxu0 %v3538_v38 }
  0x48   :  { %3308 = vmatprep.subr.bf16.mxu0 %v3607_v1  ;;  %3303 = vmatpush3.bf16.msra.mxu1 %v3540_v41  ;;  %v2925_v41 = vld [vmem:[%s4272_s5 + $0xa] ss:$0 sm:$0xff] }
  0x49   :  { %3316 = vmatprep.subr.bf16.mxu1 %v3607_v1 }
  0x4a   :  { %3297 = vmatmul.mubr.msk.bf16.vlgmr.msra.gmra.mxu0 %vm313_vm1, %v35_v40 }
  0x4b   :  { %3312 = vmatprep.mubr.msk.bf16.mxu0 %vm3608_vm0, %v3607_v1  ;;  %3309 = vmatpush3.bf16.msra.mxu0 %v3541_v42 }
  0x4c   :  { %3310 = vmatprep.subr.bf16.mxu0 %v3607_v1  ;;  %3305 = vmatmul.mubr.msk.bf16.vlgmr.msra.gmra.mxu1 %vm313_vm1, %v36_v43 }
  0x4d   :  { %3320 = vmatprep.mubr.msk.bf16.mxu1 %vm3608_vm0, %v3607_v1  ;;  %3317 = vmatpush3.bf16.msra.mxu1 %v3543_v45 }
  0x4e   :  { %3318 = vmatprep.subr.bf16.mxu1 %v3607_v1 }
  0x4f   :  { %3311 = vmatpush3.bf16.msra.mxu0 %v3542_v44  ;;  %v2926_v44 = vld [vmem:[%s4272_s5 + $0xb] ss:$0 sm:$0xff] }
  0x50   :  { %3324 = vmatprep.subr.bf16.mxu0 %v3607_v1 }
  0x51   :  { %3319 = vmatpush3.bf16.msra.mxu1 %v3544_v46 }
  0x52   :  { %3313 = vmatmul.mubr.msk.bf16.vlgmr.msra.gmra.mxu0 %vm313_vm1, %v35_v40  ;;  %3332 = vmatprep.subr.bf16.mxu1 %v3607_v1 }
  0x53   :  { %3325 = vmatpush3.bf16.msra.mxu0 %v3545_v47  ;;  %3328 = vmatprep.mubr.msk.bf16.mxu0 %vm3608_vm0, %v3607_v1 }
  0x54   :  { %3326 = vmatprep.subr.bf16.mxu0 %v3607_v1  ;;  %3321 = vmatmul.mubr.msk.bf16.vlgmr.msra.gmra.mxu1 %vm313_vm1, %v36_v43 }
  0x55   :  { %3333 = vmatpush3.bf16.msra.mxu1 %v3547_v49  ;;  %3336 = vmatprep.mubr.msk.bf16.mxu1 %vm3608_vm0, %v3607_v1 }
  0x56   :  { %3334 = vmatprep.subr.bf16.mxu1 %v3607_v1 }
  0x57   :  { %3327 = vmatpush3.bf16.msra.mxu0 %v3546_v48 }
  0x58   :  { %3340 = vmatprep.subr.bf16.mxu0 %v3607_v1 }
  0x59   :  { %3335 = vmatpush3.bf16.msra.mxu1 %v3548_v50 }
  0x5a   :  { %3329 = vmatmul.mubr.msk.bf16.vlgmr.msra.gmra.mxu0 %vm313_vm1, %v35_v40  ;;  %3348 = vmatprep.subr.bf16.mxu1 %v3607_v1 }
  0x5b   :  { %3341 = vmatpush3.bf16.msra.mxu0 %v3549_v51  ;;  %3344 = vmatprep.mubr.msk.bf16.mxu0 %vm3608_vm0, %v3607_v1 }
  0x5c   :  { %3342 = vmatprep.subr.bf16.mxu0 %v3607_v1  ;;  %3337 = vmatmul.mubr.msk.bf16.vlgmr.msra.gmra.mxu1 %vm313_vm1, %v36_v43 }
  0x5d   :  { %3349 = vmatpush3.bf16.msra.mxu1 %v3551_v53  ;;  %3352 = vmatprep.mubr.msk.bf16.mxu1 %vm3608_vm0, %v3607_v1 }
  0x5e   :  { %3350 = vmatprep.subr.bf16.mxu1 %v3607_v1 }
  0x5f   :  { %3343 = vmatpush3.bf16.msra.mxu0 %v3550_v52 }
  0x60   :  { %3356 = vmatprep.subr.bf16.mxu0 %v3607_v1 }
  0x61   :  { %3351 = vmatpush3.bf16.msra.mxu1 %v3552_v54 }
  0x62   :  { %3345 = vmatmul.mubr.msk.bf16.vlgmr.msra.gmra.mxu0 %vm313_vm1, %v35_v40  ;;  %3362 = vmatprep.subr.bf16.mxu1 %v3607_v1 }
  0x63   :  { %3358 = vmatprep.mubr.msk.bf16.mxu0 %vm3608_vm0, %v3607_v1 }
  0x64   :  { %3353 = vmatmul.mubr.msk.bf16.vlgmr.msra.gmra.mxu1 %vm313_vm1, %v36_v43 }
  0x65   :  { %3364 = vmatprep.mubr.msk.bf16.mxu1 %vm3608_vm0, %v3607_v1 }
  0xc9   :  { %v351_v55 = vpop.f32.mrf.mxu0 }
  0xca   :  { %v406_v56 = vpop.f32.mrf.mxu1  ;;  %v352_v42 = vadd.f32 %v2915_v33, %v351_v55  ;;  %v2917_v55 = vld [vmem:[%s4272_s5 + $0x2] ss:$0 sm:$0xff] }
  0xcb   :  { %v3170_v57 = vpop.f32.mrf.mxu0  ;;  %v407_v45 = vadd.f32 %v2916_v36, %v406_v56  ;;  %v2918_v56 = vld [vmem:[%s4272_s5 + $0x3] ss:$0 sm:$0xff] }
  0xcc   :  { %v3178_v58 = vpop.f32.mrf.mxu1  ;;  %v1568_v51 = vpack.c.bf16 %v352_v42, %v352_v42 }
  0xcd   :  { %v354_v59 = vpop.f32.mrf.mxu0  ;;  %v1569_v54 = vpack.c.bf16 %v407_v45, %v407_v45 }
  0xce   :  { %v409_v60 = vpop.f32.mrf.mxu1 }
  0xcf   :  { %v3171_v61 = vpop.f32.mrf.mxu0 }
  0xd0   :  { %v3179_v62 = vpop.f32.mrf.mxu1 }
  0xd1   :  { %v3945_v63 = vpop.f32.mrf.mxu0 }
  0xd2   :  { %v3947_v0 = vpop.f32.mrf.mxu1 }
  0xd3   :  { %v3186_v2 = vpop.f32.mrf.mxu0 }
  0xd4   :  { %v3194_v3 = vpop.f32.mrf.mxu1  ;;  %v2927_v2 = vld [vmem:[%s4272_s5 + $0xc] ss:$0 sm:$0xff] }
  0xd5   :  { %v461_v4 = vpop.f32.mrf.mxu0  ;;  %v459_v3 = vadd.f32 %v2917_v55, %v3945_v63 }
  0xd6   :  { %v513_v5 = vpop.f32.mrf.mxu1 }
  0xd7   :  { %v3187_v6 = vpop.f32.mrf.mxu0  ;;  %v2928_v5 = vld [vmem:[%s4272_s5 + $0xd] ss:$0 sm:$0xff] }
  0xd8   :  { %v3195_v7 = vpop.f32.mrf.mxu1  ;;  %v511_v6 = vadd.f32 %v2918_v56, %v3947_v0  ;;  %v2919_v0 = vld [vmem:[%s4272_s5 + $0x4] ss:$0 sm:$0xff] }
  0xd9   :  { %v3949_v8 = vpop.f32.mrf.mxu0 }
  0xda   :  { %v3951_v9 = vpop.f32.mrf.mxu1 }
  0xdb   :  { %v3202_v10 = vpop.f32.mrf.mxu0 }
  0xdc   :  { %v3210_v11 = vpop.f32.mrf.mxu1 }
  0xdd   :  { %v565_v12 = vpop.f32.mrf.mxu0 }
  0xde   :  { %v617_v13 = vpop.f32.mrf.mxu1 }
  0xdf   :  { %v3203_v14 = vpop.f32.mrf.mxu0  ;;  %v1570_v13 = vpack.c.bf16 %v459_v3, %v459_v3 }
  0xe0   :  { %v3211_v15 = vpop.f32.mrf.mxu1 }
  0xe1   :  { %v3953_v16 = vpop.f32.mrf.mxu0 }
  0xe2   :  { %v3955_v17 = vpop.f32.mrf.mxu1 }
  0xe3   :  { %v3218_v18 = vpop.f32.mrf.mxu0 }
  0xe4   :  { %v3226_v19 = vpop.f32.mrf.mxu1  ;;  %v1571_v18 = vpack.c.bf16 %v511_v6, %v511_v6 }
  0xe5   :  { %v669_v20 = vpop.f32.mrf.mxu0 }
  0xe6   :  { %v721_v21 = vpop.f32.mrf.mxu1 }
  0xe7   :  { %v3219_v22 = vpop.f32.mrf.mxu0  ;;  %v2920_v21 = vld [vmem:[%s4272_s5 + $0x5] ss:$0 sm:$0xff] }
  0xe8   :  { %v3227_v24 = vpop.f32.mrf.mxu1 }
  0xe9   :  { %v773_v26 = vpop.f32.mrf.mxu0 }
  0xea   :  { %v774_v27 = vadd.f32 %v2923_v23, %v773_v26  ;;  %v828_v28 = vpop.f32.mrf.mxu1  ;;  %v2929_v26 = vld [vmem:[%s4272_s5 + $0xe] ss:$0 sm:$0xff] }
  0xeb   :  { %v829_v29 = vadd.f32 %v2924_v25, %v828_v28  ;;  %v3234_v30 = vpop.f32.mrf.mxu0 }
  0xec   :  { %v1576_v31 = vpack.c.bf16 %v774_v27, %v774_v27  ;;  %v3242_v32 = vpop.f32.mrf.mxu1  ;;  %v563_v27 = vadd.f32 %v2919_v0, %v3949_v8  ;;  %v615_v30 = vadd.f32 %v2920_v21, %v3951_v9  ;;  %v2921_v9 = vld [vmem:[%s4272_s5 + $0x6] ss:$0 sm:$0xff] }
  0xed   :  { %v1577_v34 = vpack.c.bf16 %v829_v29, %v829_v29  ;;  %v776_v35 = vpop.f32.mrf.mxu0  ;;  %v2930_v29 = vld [vmem:[%s4272_s5 + $0xf] ss:$0 sm:$0xff] }
  0xee   :  { %v1597_v37 = vsel %vm1592_vm2, %v1576_v31, 0  ;;  %v831_v38 = vpop.f32.mrf.mxu1  ;;  %v1572_v35 = vpack.c.bf16 %v563_v27, %v563_v27 }
  0xef   :  { %v1643_v39 = vsel %vm1592_vm2, %v1577_v34, 0  ;;  %v3235_v40 = vpop.f32.mrf.mxu0  ;;  %3357 = vmatpush3.bf16.xpose.msra.mxu0 %v1597_v37  ;;  %v1573_v38 = vpack.c.bf16 %v615_v30, %v615_v30 }
  0xf0   :  { %v3243_v43 = vpop.f32.mrf.mxu1  ;;  %3363 = vmatpush3.bf16.xpose.msra.mxu1 %v1643_v39  ;;  %3368 = vmatprep.subr.bf16.mxu0 %v3607_v1 }
  0xf1   :  { %v880_v46 = vpop.f32.mrf.mxu0  ;;  %3374 = vmatprep.subr.bf16.mxu1 %v3607_v1 }
  0xf2   :  { %v881_v47 = vadd.f32 %v2925_v41, %v880_v46  ;;  %v932_v48 = vpop.f32.mrf.mxu1  ;;  %v2922_v41 = vld [vmem:[%s4272_s5 + $0x7] ss:$0 sm:$0xff]  ;;  %v667_v46 = vadd.f32 %v2921_v9, %v3953_v16  ;;  %v2931_v16 = vld [vmem:[%s4272_s5 + $0x10] ss:$0 sm:$0xff] }
  0xf3   :  { %v933_v49 = vadd.f32 %v2926_v44, %v932_v48  ;;  %v3250_v50 = vpop.f32.mrf.mxu0  ;;  %v719_v48 = vadd.f32 %v2922_v41, %v3955_v17 }
  0xf4   :  { %v1578_v52 = vpack.c.bf16 %v881_v47, %v881_v47  ;;  %v3258_v53 = vpop.f32.mrf.mxu1 }
  0xf5   :  { %v1579_v57 = vpack.c.bf16 %v933_v49, %v933_v49  ;;  %v883_v58 = vpop.f32.mrf.mxu0  ;;  %v1574_v49 = vpack.c.bf16 %v667_v46, %v667_v46  ;;  %v1575_v50 = vpack.c.bf16 %v719_v48, %v719_v48  ;;  %v2932_v53 = vld [vmem:[%s4272_s5 + $0x11] ss:$0 sm:$0xff] }
  0xf6   :  { %v1689_v59 = vsel %vm1592_vm2, %v1578_v52, 0  ;;  %v935_v60 = vpop.f32.mrf.mxu1  ;;  %3359 = vmatmul.mubr.msk.bf16.vlgmr.msra.gmra.mxu0 %vm1592_vm2, %v1568_v51 }
  0xf7   :  { %v1735_v61 = vsel %vm1592_vm2, %v1579_v57, 0  ;;  %3365 = vmatmul.mubr.msk.bf16.vlgmr.msra.gmra.mxu1 %vm1592_vm2, %v1569_v54  ;;  %v3251_v62 = vpop.f32.mrf.mxu0  ;;  %3369 = vmatpush3.bf16.xpose.msra.mxu0 %v1689_v59 }
  0xf8   :  { %v3259_v4 = vpop.f32.mrf.mxu1  ;;  %3375 = vmatpush3.bf16.xpose.msra.mxu1 %v1735_v61  ;;  %3370 = vmatprep.mubr.msk.bf16.mxu0 %vm3608_vm0, %v3607_v1 }
  0xf9   :  { %v984_v7 = vpop.f32.mrf.mxu0  ;;  %3376 = vmatprep.mubr.msk.bf16.mxu1 %vm3608_vm0, %v3607_v1  ;;  %3380 = vmatprep.subr.bf16.mxu0 %v3607_v1 }
  0xfa   :  { %v985_v10 = vadd.f32 %v2927_v2, %v984_v7  ;;  %v1036_v11 = vpop.f32.mrf.mxu1  ;;  %3386 = vmatprep.subr.bf16.mxu1 %v3607_v1 }
  0xfb   :  { %v1037_v63 = vadd.f32 %v2928_v5, %v1036_v11  ;;  %v3266_v12 = vpop.f32.mrf.mxu0 }
  0xfc   :  { %v1580_v14 = vpack.c.bf16 %v985_v10, %v985_v10  ;;  %v3274_v15 = vpop.f32.mrf.mxu1 }
  0xfd   :  { %v1581_v19 = vpack.c.bf16 %v1037_v63, %v1037_v63  ;;  %v987_v20 = vpop.f32.mrf.mxu0 }
  0xfe   :  { %v1781_v22 = vsel %vm1592_vm2, %v1580_v14, 0  ;;  %v1039_v23 = vpop.f32.mrf.mxu1  ;;  %3371 = vmatmul.mubr.msk.bf16.vlgmr.msra.gmra.mxu0 %vm1592_vm2, %v1570_v13 }
  0xff   :  { %v1827_v24 = vsel %vm1592_vm2, %v1581_v19, 0  ;;  %3377 = vmatmul.mubr.msk.bf16.vlgmr.msra.gmra.mxu1 %vm1592_vm2, %v1571_v18  ;;  %v3267_v25 = vpop.f32.mrf.mxu0  ;;  %3381 = vmatpush3.bf16.xpose.msra.mxu0 %v1781_v22 }
 0x100   :  { %v3275_v28 = vpop.f32.mrf.mxu1  ;;  %3387 = vmatpush3.bf16.xpose.msra.mxu1 %v1827_v24  ;;  %3382 = vmatprep.mubr.msk.bf16.mxu0 %vm3608_vm0, %v3607_v1 }
 0x101   :  { %v1088_v31 = vpop.f32.mrf.mxu0  ;;  %3388 = vmatprep.mubr.msk.bf16.mxu1 %vm3608_vm0, %v3607_v1  ;;  %3392 = vmatprep.subr.bf16.mxu0 %v3607_v1 }
 0x102   :  { %v1089_v32 = vadd.f32 %v2929_v26, %v1088_v31  ;;  %v1140_v33 = vpop.f32.mrf.mxu1  ;;  %3398 = vmatprep.subr.bf16.mxu1 %v3607_v1  ;;  %v3019_v31 = vld [vmem:[%s4270_s3] ss:$0 sm:$0xff] }
 0x103   :  { %v1141_v8 = vadd.f32 %v2930_v29, %v1140_v33  ;;  %v3282_v34 = vpop.f32.mrf.mxu0 }
 0x104   :  { %v1582_v36 = vpack.c.bf16 %v1089_v32, %v1089_v32  ;;  %v3290_v37 = vpop.f32.mrf.mxu1 }
 0x105   :  { %v1583_v39 = vpack.c.bf16 %v1141_v8, %v1141_v8  ;;  %v1091_v40 = vpop.f32.mrf.mxu0 }
 0x106   :  { %v1873_v42 = vsel %vm1592_vm2, %v1582_v36, 0  ;;  %v1143_v43 = vpop.f32.mrf.mxu1  ;;  %3383 = vmatmul.mubr.msk.bf16.vlgmr.msra.gmra.mxu0 %vm1592_vm2, %v1572_v35  ;;  %v3020_v35 = vld [vmem:[%s4270_s3 + $0x1] ss:$0 sm:$0xff] }
 0x107   :  { %v1919_v44 = vsel %vm1592_vm2, %v1583_v39, 0  ;;  %3389 = vmatmul.mubr.msk.bf16.vlgmr.msra.gmra.mxu1 %vm1592_vm2, %v1573_v38  ;;  %v3283_v45 = vpop.f32.mrf.mxu0  ;;  %3393 = vmatpush3.bf16.xpose.msra.mxu0 %v1873_v42 }
 0x108   :  { %v3291_v47 = vpop.f32.mrf.mxu1  ;;  %3399 = vmatpush3.bf16.xpose.msra.mxu1 %v1919_v44  ;;  %3394 = vmatprep.mubr.msk.bf16.mxu0 %vm3608_vm0, %v3607_v1  ;;  %v3021_v44 = vld [vmem:[%s4270_s3 + $0x2] ss:$0 sm:$0xff] }
 0x109   :  { %3400 = vmatprep.mubr.msk.bf16.mxu1 %vm3608_vm0, %v3607_v1  ;;  %3404 = vmatprep.subr.bf16.mxu0 %v3607_v1 }
 0x10a   :  { %3410 = vmatprep.subr.bf16.mxu1 %v3607_v1  ;;  %v1195_v17 = vpop.f32.mrf.mxu0 }
 0x10b   :  { %v1196_v51 = vadd.f32 %v2931_v16, %v1195_v17 }
 0x10c   :  { %v3298_v52 = vpop.f32.mrf.mxu0  ;;  %v1250_v57 = vpop.f32.mrf.mxu1 }
 0x10d   :  { %v1584_v54 = vpack.c.bf16 %v1196_v51, %v1196_v51  ;;  %v1251_v56 = vadd.f32 %v2932_v53, %v1250_v57 }
 0x10e   :  { %3395 = vmatmul.mubr.msk.bf16.vlgmr.msra.gmra.mxu0 %vm1592_vm2, %v1574_v49  ;;  %v1198_v55 = vpop.f32.mrf.mxu0  ;;  %v3306_v60 = vpop.f32.mrf.mxu1 }
 0x10f   :  { %3401 = vmatmul.mubr.msk.bf16.vlgmr.msra.gmra.mxu1 %vm1592_vm2, %v1575_v50  ;;  %3406 = vmatprep.mubr.msk.bf16.mxu0 %vm3608_vm0, %v3607_v1  ;;  %v2134_v58 = vsel %vm2132_vm3, %v1584_v54, 0  ;;  %v1585_v61 = vpack.c.bf16 %v1251_v56, %v1251_v56  ;;  %v3022_v50 = vld [vmem:[%s4270_s3 + $0x3] ss:$0 sm:$0xff]  ;;  %v3023_v56 = vld [vmem:[%s4270_s3 + $0x4] ss:$0 sm:$0xff] }
 0x110   :  { %3412 = vmatprep.mubr.msk.bf16.mxu1 %vm3608_vm0, %v3607_v1  ;;  %v3299_v59 = vpop.f32.mrf.mxu0  ;;  %3405 = vmatpush3.bf16.msra.mxu0 %v2134_v58  ;;  %v1253_v62 = vpop.f32.mrf.mxu1 }
 0x111   :  { %3416 = vmatprep.subr.bf16.mxu0 %v3607_v1  ;;  %v2180_v2 = vsel %vm2132_vm3, %v1585_v61, 0  ;;  %v3024_v62 = vld [vmem:[%s4270_s3 + $0x5] ss:$0 sm:$0xff] }
 0x112   :  { %v4060_v3 = vpop.f32.mrf.mxu0  ;;  %v3307_v4 = vpop.f32.mrf.mxu1  ;;  %3411 = vmatpush3.bf16.msra.mxu1 %v2180_v2 }
 0x113   :  { %3422 = vmatprep.subr.bf16.mxu1 %v3607_v1 }
 0x114   :  { %v3314_v5 = vpop.f32.mrf.mxu0  ;;  %v4063_v7 = vpop.f32.mrf.mxu1 }
 0x116   :  { %v1305_v6 = vpop.f32.mrf.mxu0  ;;  %v3322_v11 = vpop.f32.mrf.mxu1 }
 0x118   :  { %v3315_v10 = vpop.f32.mrf.mxu0  ;;  %v1357_v63 = vpop.f32.mrf.mxu1 }
 0x11a   :  { %v4065_v12 = vpop.f32.mrf.mxu0  ;;  %v3323_v13 = vpop.f32.mrf.mxu1 }
 0x11c   :  { %v3330_v14 = vpop.f32.mrf.mxu0  ;;  %v4067_v18 = vpop.f32.mrf.mxu1 }
 0x11e   :  { %v1409_v15 = vpop.f32.mrf.mxu0  ;;  %v3338_v19 = vpop.f32.mrf.mxu1 }
 0x120   :  { %v3331_v0 = vpop.f32.mrf.mxu0  ;;  %v1461_v20 = vpop.f32.mrf.mxu1 }
 0x121   :  { %v3025_v20 = vld [vmem:[%s4270_s3 + $0x6] ss:$0 sm:$0xff] }
 0x122   :  { %v4069_v21 = vpop.f32.mrf.mxu0  ;;  %v3339_v22 = vpop.f32.mrf.mxu1 }
 0x124   :  { %v3346_v23 = vpop.f32.mrf.mxu0  ;;  %v4071_v25 = vpop.f32.mrf.mxu1 }
 0x126   :  { %v1513_v24 = vpop.f32.mrf.mxu0  ;;  %v3354_v27 = vpop.f32.mrf.mxu1 }
 0x127   :  { %v3026_v24 = vld [vmem:[%s4270_s3 + $0x7] ss:$0 sm:$0xff] }
 0x128   :  { %v3347_v26 = vpop.f32.mrf.mxu0  ;;  %v1565_v28 = vpop.f32.mrf.mxu1 }
 0x12a   :  { %v3355_v29 = vpop.f32.mrf.mxu1 }
 0x1b6   :  { %v1633_v30 = vpop.f32.mrf.mxu0 }
 0x1b7   :  { %v1961_v32 = vmul.f32 0.35355338, %v1633_v30  ;;  %v1679_v33 = vpop.f32.mrf.mxu1 }
 0x1b8   :  { %v1962_v8 = vmul.f32 0.35355338, %v1679_v33  ;;  %v3360_v34 = vpop.f32.mrf.mxu0 }
 0x1b9   :  { %v3366_v36 = vpop.f32.mrf.mxu1  ;;  %v4079_v37 = vadd.f32 %v3019_v31, %v1961_v32 }
 0x1ba   :  { %v1636_v38 = vpop.f32.mrf.mxu0  ;;  %v4083_v40 = vadd.f32 %v3020_v35, %v1962_v8 }
 0x1bb   :  { %v1682_v9 = vpop.f32.mrf.mxu1  ;;  %v2033_v39 = vsel %vm1592_vm2, %v4079_v37, -inf }
 0x1bc   :  { %2034 = vmax.xlane.f32.xlu0 %v2033_v39  ;;  %v3361_v41 = vpop.f32.mrf.mxu0  ;;  %v2036_v47 = vsel %vm1592_vm2, %v4083_v40, -inf }
 0x1bd   :  { %v3367_v42 = vpop.f32.mrf.mxu1 }
 0x1be   :  { %v1725_v43 = vpop.f32.mrf.mxu0 }
 0x1bf   :  { %v1963_v45 = vmul.f32 0.35355338, %v1725_v43  ;;  %v1771_v46 = vpop.f32.mrf.mxu1 }
 0x1c0   :  { %v1964_v48 = vmul.f32 0.35355338, %v1771_v46  ;;  %2037 = vmax.xlane.f32.xlu0 %v2036_v47  ;;  %v3372_v49 = vpop.f32.mrf.mxu0 }
 0x1c1   :  { %v3378_v16 = vpop.f32.mrf.mxu1  ;;  %v2027_v17 = vadd.f32 %v3021_v44, %v1963_v45 }
 0x1c2   :  { %v1728_v51 = vpop.f32.mrf.mxu0  ;;  %v2028_v54 = vadd.f32 %v3022_v50, %v1964_v48 }
 0x1c3   :  { %v1774_v52 = vpop.f32.mrf.mxu1  ;;  %v2039_v53 = vsel %vm1592_vm2, %v2027_v17, -inf }
 0x1c4   :  { %2040 = vmax.xlane.f32.xlu1 %v2039_v53  ;;  %v3373_v55 = vpop.f32.mrf.mxu0  ;;  %v2042_v61 = vsel %vm1592_vm2, %v2028_v54, -inf }
 0x1c5   :  { %v3379_v57 = vpop.f32.mrf.mxu1 }
 0x1c6   :  { %v1817_v58 = vpop.f32.mrf.mxu0 }
 0x1c7   :  { %v1965_v59 = vmul.f32 0.35355338, %v1817_v58  ;;  %v1863_v60 = vpop.f32.mrf.mxu1 }
 0x1c8   :  { %v1966_v2 = vmul.f32 0.35355338, %v1863_v60  ;;  %2043 = vmax.xlane.f32.xlu1 %v2042_v61  ;;  %v3384_v4 = vpop.f32.mrf.mxu0 }
 0x1c9   :  { %v3390_v5 = vpop.f32.mrf.mxu1  ;;  %v2029_v6 = vadd.f32 %v3023_v56, %v1965_v59 }
 0x1ca   :  { %v1820_v10 = vpop.f32.mrf.mxu0  ;;  %v2030_v11 = vadd.f32 %v3024_v62, %v1966_v2 }
 0x1cb   :  { %v1866_v63 = vpop.f32.mrf.mxu1  ;;  %v2045_v13 = vsel %vm1592_vm2, %v2029_v6, -inf }
 0x1cc   :  { %v2048_v14 = vsel %vm1592_vm2, %v2030_v11, -inf  ;;  %2046 = vmax.xlane.f32.xlu0 %v2045_v13  ;;  %v3385_v15 = vpop.f32.mrf.mxu0 }
 0x1cd   :  { %v3391_v0 = vpop.f32.mrf.mxu1  ;;  %2049 = vmax.xlane.f32.xlu1 %v2048_v14 }
 0x1ce   :  { %v1909_v19 = vpop.f32.mrf.mxu0 }
 0x1cf   :  { %v1967_v22 = vmul.f32 0.35355338, %v1909_v19  ;;  %v1955_v23 = vpop.f32.mrf.mxu1 }
 0x1d0   :  { %v1968_v26 = vmul.f32 0.35355338, %v1955_v23  ;;  %v3396_v27 = vpop.f32.mrf.mxu0 }
 0x1d1   :  { %v3402_v28 = vpop.f32.mrf.mxu1  ;;  %v2031_v29 = vadd.f32 %v3025_v20, %v1967_v22  ;;  %v2933_v20 = vld [vmem:[%s4272_s5 + $0x12] ss:$0 sm:$0xff] }
 0x1d2   :  { %v1912_v30 = vpop.f32.mrf.mxu0  ;;  %v2032_v31 = vadd.f32 %v3026_v24, %v1968_v26  ;;  %v1303_v23 = vadd.f32 %v2933_v20, %v4060_v3  ;;  %v2934_v24 = vld [vmem:[%s4272_s5 + $0x13] ss:$0 sm:$0xff]  ;;  %v2509_v20 = vld [vmem:[%s4273_s6 + $0xc] sm:$0xf] }
 0x1d3   :  { %v1958_v32 = vpop.f32.mrf.mxu1  ;;  %v2051_v33 = vsel %vm1592_vm2, %v2031_v29, -inf }
 0x1d4   :  { %v2054_v8 = vsel %vm1592_vm2, %v2032_v31, -inf  ;;  %2052 = vmax.xlane.f32.xlu0 %v2051_v33  ;;  %v3397_v34 = vpop.f32.mrf.mxu0  ;;  %v1586_v28 = vpack.c.bf16 %v1303_v23, %v1303_v23 }
 0x1d5   :  { %v3403_v35 = vpop.f32.mrf.mxu1  ;;  %2055 = vmax.xlane.f32.xlu1 %v2054_v8 }
 0x1d6   :  { %v2226_v34 = vsel %vm2132_vm3, %v1586_v28, 0 }
 0x245   :  { %v2035_v36 = vpop.xlane.xlu0 %2034 }
 0x246   :  { %v2057_v38 = vsub.f32 %v4079_v37, %v2035_v36 }
 0x248   :  { %v2065_v9 = vmul.f32 1.442695, %v2057_v38 }
 0x249   :  { %v2038_v39 = vpop.xlane.xlu0 %2037 }
 0x24a   :  { %3553 = vpow2.f32 %v2065_v9  ;;  %v2058_v41 = vsub.f32 %v4083_v40, %v2038_v39 }
 0x24c   :  { %v2067_v42 = vmul.f32 1.442695, %v2058_v41 }
 0x24d   :  { %v2041_v43 = vpop.xlane.xlu1 %2040 }
 0x24e   :  { %3555 = vpow2.f32 %v2067_v42  ;;  %v2059_v44 = vsub.f32 %v2027_v17, %v2041_v43 }
 0x250   :  { %v2069_v45 = vmul.f32 1.442695, %v2059_v44  ;;  %v2937_v44 = vld [vmem:[%s4272_s5 + $0x16] ss:$0 sm:$0xff] }
 0x251   :  { %v2044_v46 = vpop.xlane.xlu1 %2043 }
 0x252   :  { %3557 = vpow2.f32 %v2069_v45  ;;  %v2060_v47 = vsub.f32 %v2028_v54, %v2044_v46 }
 0x254   :  { %v2071_v48 = vmul.f32 1.442695, %v2060_v47 }
 0x255   :  { %v2047_v49 = vpop.xlane.xlu0 %2046 }
 0x256   :  { %3559 = vpow2.f32 %v2071_v48  ;;  %v2050_v50 = vpop.xlane.xlu1 %2049  ;;  %v2061_v16 = vsub.f32 %v2029_v6, %v2047_v49 }
 0x257   :  { %v3554_v51 = vpop.eup %3553  ;;  %v2062_v37 = vsub.f32 %v2030_v11, %v2050_v50  ;;  %v1511_v50 = vadd.f32 %v2937_v44, %v4069_v21 }
 0x258   :  { %v2073_v52 = vmul.f32 1.442695, %v2061_v16  ;;  %v2081_v53 = vsel %vm1592_vm2, %v3554_v51, 0.0 }
 0x259   :  { %v2075_v55 = vmul.f32 1.442695, %v2062_v37  ;;  %2082 = vadd.xlane.f32.xlu0 %v2081_v53  ;;  %v1590_v21 = vpack.c.bf16 %v1511_v50, %v1511_v50 }
 0x25a   :  { %3561 = vpow2.f32 %v2073_v52 }
 0x25b   :  { %v3556_v40 = vpop.eup %3555  ;;  %3563 = vpow2.f32 %v2075_v55 }
 0x25c   :  { %v2084_v17 = vsel %vm1592_vm2, %v3556_v40, 0.0 }
 0x25d   :  { %2085 = vadd.xlane.f32.xlu1 %v2084_v17  ;;  %v2053_v57 = vpop.xlane.xlu0 %2052 }
 0x25e   :  { %v2056_v54 = vpop.xlane.xlu1 %2055  ;;  %v2063_v58 = vsub.f32 %v2031_v29, %v2053_v57  ;;  %v1355_v29 = vadd.f32 %v2934_v24, %v4063_v7  ;;  %v2936_v7 = vld [vmem:[%s4272_s5 + $0x15] ss:$0 sm:$0xff] }
 0x25f   :  { %v3558_v56 = vpop.eup %3557  ;;  %v2064_v59 = vsub.f32 %v2032_v31, %v2056_v54  ;;  %v2935_v31 = vld [vmem:[%s4272_s5 + $0x14] ss:$0 sm:$0xff] }
 0x260   :  { %v2077_v60 = vmul.f32 1.442695, %v2063_v58  ;;  %v2087_v61 = vsel %vm1592_vm2, %v3558_v56, 0.0  ;;  %v1587_v35 = vpack.c.bf16 %v1355_v29, %v1355_v29  ;;  %v1407_v36 = vadd.f32 %v2935_v31, %v4065_v12  ;;  %v2510_v29 = vld [vmem:[%s4273_s6 + $0x10] sm:$0xf] }
 0x261   :  { %v2079_v62 = vmul.f32 1.442695, %v2064_v59  ;;  %2088 = vadd.xlane.f32.xlu0 %v2087_v61  ;;  %v1459_v12 = vadd.f32 %v2936_v7, %v4067_v18  ;;  %v2410_v58 = vsel %vm2132_vm3, %v1590_v21, 0 }
 0x262   :  { %3565 = vpow2.f32 %v2077_v60  ;;  %v2272_v41 = vsel %vm2132_vm3, %v1587_v35, 0  ;;  %v1588_v42 = vpack.c.bf16 %v1407_v36, %v1407_v36 }
 0x263   :  { %v4116_v2 = vpop.eup %3559  ;;  %3567 = vpow2.f32 %v2079_v62  ;;  %v1589_v49 = vpack.c.bf16 %v1459_v12, %v1459_v12 }
 0x264   :  { %v2090_v4 = vsel %vm1592_vm2, %v4116_v2, 0.0  ;;  %v2318_v18 = vsel %vm2132_vm3, %v1588_v42, 0 }
 0x265   :  { %2091 = vadd.xlane.f32.xlu1 %v2090_v4  ;;  %v2364_v55 = vsel %vm2132_vm3, %v1589_v49, 0 }
 0x267   :  { %v4120_v5 = vpop.eup %3561 }
 0x268   :  { %v4122_v6 = vpop.eup %3563  ;;  %v2093_v10 = vsel %vm1592_vm2, %v4120_v5, 0.0 }
 0x269   :  { %v2096_v11 = vsel %vm1592_vm2, %v4122_v6, 0.0  ;;  %2094 = vadd.xlane.f32.xlu0 %v2093_v10 }
 0x26a   :  { %2097 = vadd.xlane.f32.xlu1 %v2096_v11  ;;  %v2507_v11 = vld [vmem:[%s4273_s6 + $0x4] sm:$0xf] }
 0x26f   :  { %v4128_v63 = vpop.eup %3565 }
 0x270   :  { %v4130_v13 = vpop.eup %3567  ;;  %v2099_v14 = vsel %vm1592_vm2, %v4128_v63, 0.0 }
 0x271   :  { %v2102_v15 = vsel %vm1592_vm2, %v4130_v13, 0.0  ;;  %2100 = vadd.xlane.f32.xlu0 %v2099_v14 }
 0x272   :  { %2103 = vadd.xlane.f32.xlu1 %v2102_v15 }
 0x2e2   :  { %v2083_v0 = vpop.xlane.xlu0 %2082 }
 0x2e3   :  { %3569 = vrcp.f32 %v2083_v0 }
 0x2e6   :  { %v2086_v19 = vpop.xlane.xlu1 %2085 }
 0x2e7   :  { %3571 = vrcp.f32 %v2086_v19 }
 0x2ea   :  { %v2089_v22 = vpop.xlane.xlu0 %2088 }
 0x2eb   :  { %3573 = vrcp.f32 %v2089_v22 }
 0x2ee   :  { %v2092_v26 = vpop.xlane.xlu1 %2091 }
 0x2ef   :  { %3575 = vrcp.f32 %v2092_v26  ;;  %v2656_v26 = vsel %vm2132_vm3, %v2509_v20, 0 }
 0x2f0   :  { %v3570_v27 = vpop.eup %3569 }
 0x2f1   :  { %v2113_v30 = vmul.f32 %v3570_v27, %v3554_v51  ;;  %v2938_v51 = vld [vmem:[%s4272_s5 + $0x17] ss:$0 sm:$0xff] }
 0x2f2   :  { %v2095_v32 = vpop.xlane.xlu0 %2094 }
 0x2f3   :  { %v2098_v33 = vpop.xlane.xlu1 %2097  ;;  %3577 = vrcp.f32 %v2095_v32  ;;  %v2121_v8 = vpack.c.bf16 %v2113_v30, %v2113_v30 }
 0x2f4   :  { %v3572_v3 = vpop.eup %3571  ;;  %3579 = vrcp.f32 %v2098_v33  ;;  %v2702_v33 = vsel %vm2132_vm3, %v2510_v29, 0 }
 0x2f5   :  { %3407 = vmatmul.mubr.msk.bf16.vlgmr.msra.gmra.mxu0 %vm1592_vm2, %v2121_v8  ;;  %v2114_v38 = vmul.f32 %v3572_v3, %v3556_v40  ;;  %v1563_v40 = vadd.f32 %v2938_v51, %v4071_v25 }
 0x2f6   :  { %3417 = vmatpush3.bf16.msra.mxu0 %v2226_v34  ;;  %3418 = vmatprep.mubr.msk.bf16.mxu0 %vm3608_vm0, %v3607_v1  ;;  %v2511_v34 = vld [vmem:[%s4273_s6 + $0x14] sm:$0xf] }
 0x2f7   :  { %v2122_v9 = vpack.c.bf16 %v2114_v38, %v2114_v38  ;;  %3428 = vmatprep.subr.bf16.mxu0 %v3607_v1  ;;  %v2748_v7 = vsel %vm2132_vm3, %v2511_v34, 0 }
 0x2f8   :  { %v3574_v39 = vpop.eup %3573 }
 0x2f9   :  { %3413 = vmatmul.mubr.msk.bf16.vlgmr.msra.gmra.mxu1 %vm1592_vm2, %v2122_v9  ;;  %v2115_v43 = vmul.f32 %v3574_v39, %v3558_v56  ;;  %v1591_v56 = vpack.c.bf16 %v1563_v40, %v1563_v40 }
 0x2fa   :  { %3423 = vmatpush3.bf16.msra.mxu1 %v2272_v41  ;;  %v2101_v45 = vpop.xlane.xlu0 %2100  ;;  %3424 = vmatprep.mubr.msk.bf16.mxu1 %vm3608_vm0, %v3607_v1  ;;  %v2512_v41 = vld [vmem:[%s4273_s6 + $0x18] sm:$0xf] }
 0x2fb   :  { %v2104_v46 = vpop.xlane.xlu1 %2103  ;;  %3581 = vrcp.f32 %v2101_v45  ;;  %v2123_v47 = vpack.c.bf16 %v2115_v43, %v2115_v43  ;;  %3434 = vmatprep.subr.bf16.mxu1 %v3607_v1  ;;  %v2456_v61 = vsel %vm2132_vm3, %v1591_v56, 0  ;;  %v2794_v44 = vsel %vm2132_vm3, %v2512_v41, 0 }
 0x2fc   :  { %v3576_v48 = vpop.eup %3575  ;;  %3583 = vrcp.f32 %v2104_v46 }
 0x2fd   :  { %3419 = vmatmul.mubr.msk.bf16.vlgmr.msra.gmra.mxu0 %vm1592_vm2, %v2123_v47  ;;  %v2116_v16 = vmul.f32 %v3576_v48, %v4116_v2  ;;  %v2513_v47 = vld [vmem:[%s4273_s6 + $0x1c] sm:$0xf] }
 0x2fe   :  { %3429 = vmatpush3.bf16.msra.mxu0 %v2318_v18  ;;  %3430 = vmatprep.mubr.msk.bf16.mxu0 %vm3608_vm0, %v3607_v1  ;;  %v2840_v50 = vsel %vm2132_vm3, %v2513_v47, 0 }
 0x2ff   :  { %v2124_v37 = vpack.c.bf16 %v2116_v16, %v2116_v16  ;;  %3440 = vmatprep.subr.bf16.mxu0 %v3607_v1 }
 0x300   :  { %v3578_v52 = vpop.eup %3577 }
 0x301   :  { %v3580_v53 = vpop.eup %3579  ;;  %3425 = vmatmul.mubr.msk.bf16.vlgmr.msra.gmra.mxu1 %vm1592_vm2, %v2124_v37  ;;  %v2117_v17 = vmul.f32 %v3578_v52, %v4120_v5 }
 0x302   :  { %3435 = vmatpush3.bf16.msra.mxu1 %v2364_v55  ;;  %3436 = vmatprep.mubr.msk.bf16.mxu1 %vm3608_vm0, %v3607_v1  ;;  %v2118_v54 = vmul.f32 %v3580_v53, %v4122_v6  ;;  %v2506_v6 = vld [vmem:[%s4273_s6] sm:$0xf] }
 0x303   :  { %v2125_v57 = vpack.c.bf16 %v2117_v17, %v2117_v17  ;;  %3446 = vmatprep.subr.bf16.mxu1 %v3607_v1  ;;  %v2518_v10 = vsel %vm2132_vm3, %v2506_v6, 0 }
 0x304   :  { %v2126_v25 = vpack.c.bf16 %v2118_v54, %v2118_v54 }
 0x305   :  { %3431 = vmatmul.mubr.msk.bf16.vlgmr.msra.gmra.mxu0 %vm1592_vm2, %v2125_v57 }
 0x306   :  { %3441 = vmatpush3.bf16.msra.mxu0 %v2410_v58  ;;  %3442 = vmatprep.mubr.msk.bf16.mxu0 %vm3608_vm0, %v3607_v1 }
 0x307   :  { %3452 = vmatprep.subr.bf16.mxu0 %v3607_v1 }
 0x308   :  { %v3582_v59 = vpop.eup %3581 }
 0x309   :  { %v3584_v60 = vpop.eup %3583  ;;  %3437 = vmatmul.mubr.msk.bf16.vlgmr.msra.gmra.mxu1 %vm1592_vm2, %v2126_v25  ;;  %v2119_v62 = vmul.f32 %v3582_v59, %v4128_v63  ;;  %v2564_v63 = vsel %vm2132_vm3, %v2507_v11, 0 }
 0x30a   :  { %3447 = vmatpush3.bf16.msra.mxu1 %v2456_v61  ;;  %3448 = vmatprep.mubr.msk.bf16.mxu1 %vm3608_vm0, %v3607_v1  ;;  %v2120_v4 = vmul.f32 %v3584_v60, %v4130_v13  ;;  %v2508_v13 = vld [vmem:[%s4273_s6 + $0x8] sm:$0xf] }
 0x30b   :  { %v2127_v2 = vpack.c.bf16 %v2119_v62, %v2119_v62  ;;  %3458 = vmatprep.subr.bf16.mxu1 %v3607_v1  ;;  %v2610_v0 = vsel %vm2132_vm3, %v2508_v13, 0 }
 0x30c   :  { %v2128_v5 = vpack.c.bf16 %v2120_v4, %v2120_v4 }
 0x30d   :  { %3443 = vmatmul.mubr.msk.bf16.vlgmr.msra.gmra.mxu0 %vm1592_vm2, %v2127_v2 }
 0x30e   :  { %3454 = vmatprep.mubr.msk.bf16.mxu0 %vm3608_vm0, %v3607_v1  ;;  %3453 = vmatpush3.bf16.msra.mxu0 %v2518_v10 }
 0x30f   :  { %3464 = vmatprep.subr.bf16.mxu0 %v3607_v1 }
 0x311   :  { %3449 = vmatmul.mubr.msk.bf16.vlgmr.msra.gmra.mxu1 %vm1592_vm2, %v2128_v5 }
 0x312   :  { %3460 = vmatprep.mubr.msk.bf16.mxu1 %vm3608_vm0, %v3607_v1  ;;  %3459 = vmatpush3.bf16.msra.mxu1 %v2564_v63 }
 0x313   :  { %3470 = vmatprep.subr.bf16.mxu1 %v3607_v1 }
 0x3b5   :  { %v2170_v14 = vpop.f32.mrf.mxu0 }
 0x3b6   :  { %v2498_v15 = vpack.c.bf16 %v2170_v14, %v2170_v14 }
 0x3b7   :  { %v3408_v19 = vpop.f32.mrf.mxu0 }
 0x3b8   :  { %3455 = vmatmul.mubr.msk.bf16.vlgmr.msra.gmra.mxu0 %vm1592_vm2, %v2498_v15 }
 0x3b9   :  { %v2173_v22 = vpop.f32.mrf.mxu0  ;;  %v2216_v23 = vpop.f32.mrf.mxu1  ;;  %3465 = vmatpush3.bf16.msra.mxu0 %v2610_v0  ;;  %3466 = vmatprep.mubr.msk.bf16.mxu0 %vm3608_vm0, %v3607_v1 }
 0x3ba   :  { %v2499_v24 = vpack.c.bf16 %v2216_v23, %v2216_v23  ;;  %3476 = vmatprep.subr.bf16.mxu0 %v3607_v1 }
 0x3bb   :  { %v3409_v27 = vpop.f32.mrf.mxu0  ;;  %v3414_v28 = vpop.f32.mrf.mxu1 }
 0x3bc   :  { %3461 = vmatmul.mubr.msk.bf16.vlgmr.msra.gmra.mxu1 %vm1592_vm2, %v2499_v24 }
 0x3bd   :  { %v2219_v30 = vpop.f32.mrf.mxu1  ;;  %v2262_v31 = vpop.f32.mrf.mxu0  ;;  %3471 = vmatpush3.bf16.msra.mxu1 %v2656_v26  ;;  %3472 = vmatprep.mubr.msk.bf16.mxu1 %vm3608_vm0, %v3607_v1 }
 0x3be   :  { %v2500_v32 = vpack.c.bf16 %v2262_v31, %v2262_v31  ;;  %3482 = vmatprep.subr.bf16.mxu1 %v3607_v1  ;;  %v3043_v31 = vld [vmem:[%s4274_s7] ss:$0 sm:$0xff]  ;;  %s3585_s7 = scalar_lea.vmem %s2905_s17, 256 }
 0x3bf   :  { %v3415_v8 = vpop.f32.mrf.mxu1  ;;  %v3420_v3 = vpop.f32.mrf.mxu0  ;;  %p3586_p0 = scmp.ne.s32.totalorder %s2905_s17, %s3585_s7  ;;  %p3591_p2 = scmp.lt.s32.totalorder %s3585_s7, %s3585_s7 }
 0x3c0   :  { %3467 = vmatmul.mubr.msk.bf16.vlgmr.msra.gmra.mxu0 %vm1592_vm2, %v2500_v32 }
 0x3c1   :  { %v2265_v35 = vpop.f32.mrf.mxu0  ;;  %v2308_v36 = vpop.f32.mrf.mxu1  ;;  %3477 = vmatpush3.bf16.msra.mxu0 %v2702_v33  ;;  %3478 = vmatprep.mubr.msk.bf16.mxu0 %vm3608_vm0, %v3607_v1  ;;  %p3592_p3 = por %p3591_p2, %p3590_p1 }
 0x3c2   :  { %v2501_v38 = vpack.c.bf16 %v2308_v36, %v2308_v36  ;;  %3488 = vmatprep.subr.bf16.mxu0 %v3607_v1 }
 0x3c3   :  { %v3421_v9 = vpop.f32.mrf.mxu0  ;;  %v3426_v39 = vpop.f32.mrf.mxu1  ;;  %p3593_p4 = pnand %p3592_p3, %p3586_p0 }
 0x3c4   :  { %3473 = vmatmul.mubr.msk.bf16.vlgmr.msra.gmra.mxu1 %vm1592_vm2, %v2501_v38 }
 0x3c5   :  { %v2311_v42 = vpop.f32.mrf.mxu1  ;;  %v2354_v12 = vpop.f32.mrf.mxu0  ;;  %3483 = vmatpush3.bf16.msra.mxu1 %v2748_v7  ;;  %3484 = vmatprep.mubr.msk.bf16.mxu1 %vm3608_vm0, %v3607_v1 }
 0x3c6   :  { %v2502_v43 = vpack.c.bf16 %v2354_v12, %v2354_v12  ;;  %3494 = vmatprep.subr.bf16.mxu1 %v3607_v1 }
 0x3c7   :  { %v3427_v45 = vpop.f32.mrf.mxu1  ;;  %v3432_v46 = vpop.f32.mrf.mxu0 }
 0x3c8   :  { %3479 = vmatmul.mubr.msk.bf16.vlgmr.msra.gmra.mxu0 %vm1592_vm2, %v2502_v43 }
 0x3c9   :  { %v2357_v48 = vpop.f32.mrf.mxu0  ;;  %v2400_v18 = vpop.f32.mrf.mxu1  ;;  %3489 = vmatpush3.bf16.msra.mxu0 %v2794_v44  ;;  %3490 = vmatprep.mubr.msk.bf16.mxu0 %vm3608_vm0, %v3607_v1 }
 0x3ca   :  { %v2503_v49 = vpack.c.bf16 %v2400_v18, %v2400_v18 }
 0x3cb   :  { %v3433_v16 = vpop.f32.mrf.mxu0  ;;  %v3438_v51 = vpop.f32.mrf.mxu1 }
 0x3cc   :  { %3485 = vmatmul.mubr.msk.bf16.vlgmr.msra.gmra.mxu1 %vm1592_vm2, %v2503_v49 }
 0x3cd   :  { %v2403_v37 = vpop.f32.mrf.mxu1  ;;  %v2446_v52 = vpop.f32.mrf.mxu0  ;;  %3495 = vmatpush3.bf16.msra.mxu1 %v2840_v50  ;;  %3496 = vmatprep.mubr.msk.bf16.mxu1 %vm3608_vm0, %v3607_v1 }
 0x3ce   :  { %v2504_v53 = vpack.c.bf16 %v2446_v52, %v2446_v52 }
 0x3cf   :  { %v3439_v55 = vpop.f32.mrf.mxu1  ;;  %v3444_v21 = vpop.f32.mrf.mxu0 }
 0x3d0   :  { %3491 = vmatmul.mubr.msk.bf16.vlgmr.msra.gmra.mxu0 %vm1592_vm2, %v2504_v53 }
 0x3d1   :  { %v2449_v40 = vpop.f32.mrf.mxu0  ;;  %v2492_v17 = vpop.f32.mrf.mxu1 }
 0x3d2   :  { %v2505_v57 = vpack.c.bf16 %v2492_v17, %v2492_v17 }
 0x3d3   :  { %v3445_v54 = vpop.f32.mrf.mxu0  ;;  %v3450_v58 = vpop.f32.mrf.mxu1 }
 0x3d4   :  { %3497 = vmatmul.mubr.msk.bf16.vlgmr.msra.gmra.mxu1 %vm1592_vm2, %v2505_v57 }
 0x3d5   :  { %v2495_v56 = vpop.f32.mrf.mxu1 }
 0x3d7   :  { %v3451_v25 = vpop.f32.mrf.mxu1 }
 0x478   :  { %v2554_v59 = vpop.f32.mrf.mxu0 }
 0x47a   :  { %v3456_v60 = vpop.f32.mrf.mxu0 }
 0x47c   :  { %v2557_v61 = vpop.f32.mrf.mxu0  ;;  %v2600_v62 = vpop.f32.mrf.mxu1 }
 0x47e   :  { %v3457_v2 = vpop.f32.mrf.mxu0  ;;  %v3462_v1 = vpop.f32.mrf.mxu1 }
 0x480   :  { %v2603_v4 = vpop.f32.mrf.mxu1  ;;  %v2646_v5 = vpop.f32.mrf.mxu0 }
 0x481   :  { %v2882_v24 = vadd.f32 %v2646_v5, %v2554_v59 }
 0x482   :  { %v3463_v6 = vpop.f32.mrf.mxu1  ;;  %v3468_v10 = vpop.f32.mrf.mxu0 }
 0x484   :  { %v2649_v11 = vpop.f32.mrf.mxu0  ;;  %v2692_v63 = vpop.f32.mrf.mxu1 }
 0x485   :  { %v2883_v32 = vadd.f32 %v2692_v63, %v2600_v62 }
 0x486   :  { %v3469_v13 = vpop.f32.mrf.mxu0  ;;  %v3474_v14 = vpop.f32.mrf.mxu1 }
 0x488   :  { %v2695_v15 = vpop.f32.mrf.mxu1  ;;  %v2738_v0 = vpop.f32.mrf.mxu0 }
 0x489   :  { %v2884_v28 = vadd.f32 %v2882_v24, %v2738_v0 }
 0x48a   :  { %v3475_v19 = vpop.f32.mrf.mxu1  ;;  %v3480_v20 = vpop.f32.mrf.mxu0 }
 0x48c   :  { %v2741_v22 = vpop.f32.mrf.mxu0  ;;  %v2784_v23 = vpop.f32.mrf.mxu1 }
 0x48d   :  { %v2885_v34 = vadd.f32 %v2883_v32, %v2784_v23 }
 0x48e   :  { %v3481_v26 = vpop.f32.mrf.mxu0  ;;  %v3486_v27 = vpop.f32.mrf.mxu1 }
 0x490   :  { %v2787_v29 = vpop.f32.mrf.mxu1  ;;  %v2830_v30 = vpop.f32.mrf.mxu0 }
 0x491   :  { %v2886_v33 = vadd.f32 %v2884_v28, %v2830_v30 }
 0x492   :  { %v3487_v8 = vpop.f32.mrf.mxu1  ;;  %v3492_v3 = vpop.f32.mrf.mxu0 }
 0x493   :  { %v2895_v35 = vadd.f32 %v3043_v31, %v2886_v33 }
 0x494   :  { %v2833_v36 = vpop.f32.mrf.mxu0  ;;  %v2876_v38 = vpop.f32.mrf.mxu1 }
 0x495   :  { %2897 = vst.msk [vmem:[#allocation2] sm:$0xff] %vm313_vm1, %v2895_v35  ;;  %v2887_v7 = vadd.f32 %v2885_v34, %v2876_v38 }
 0x496   :  { %v3493_v9 = vpop.f32.mrf.mxu0  ;;  %v3498_v39 = vpop.f32.mrf.mxu1 }
 0x497   :  { %v2896_v41 = vadd.f32 %v3043_v31, %v2887_v7 }
 0x498   :  { %v2879_v42 = vpop.f32.mrf.mxu1 }
 0x499   :  { %2898 = vst.msk [vmem:[#allocation2 + $0x8] sm:$0xff] %vm313_vm1, %v2896_v41 }
 0x49a   :  { %v3499_v12 = vpop.f32.mrf.mxu1 }
 0x49b   :  { %3596 = shalt.err (!%p3593_p4)
}
 0x49c   :  { %s3610_s18 = smov 128   ;;  %s3611_s19 = smov 8  }
 0x49d   :  { %2910 = dma.vmem_to_hbm [thread:$0]  %s2905_s17, 256, %s4275_s8, [#allocation3], %s3610_s18, %s3610_s18, %s3611_s19  }
 0x49e   :  { %3605 = dma.done.wait [#allocation3], 256  }
 0x49f   :  { %3606 = vsyncadd [#allocation3], 4294967040 }
 0x4a0   :  { %2914 = vsyncpa [#allocation3], 1 }

</bundles_post_ra>
